<compile_context>
chip_gen: v5e
topology: v5e:2x2
jax: 0.10.0
libtpu: 0.0.40
codegen_flags: <defaults>
</compile_context>

<pallas_src>
import jax
import jax.numpy as jnp
from jax.experimental import pallas as pl
from jax.experimental.pallas import tpu as pltpu

PALM_IDXS = (0, 1, 5, 9, 13, 17)
THUMB_IDXS = (2, 3, 4)
INDEX_IDXS = (6, 7, 8)
MIDDLE_IDXS = (10, 11, 12)
RING_IDXS = (14, 15, 16)
PINKY_IDXS = (18, 19, 20)
GROUPS = (PALM_IDXS, THUMB_IDXS, INDEX_IDXS, MIDDLE_IDXS, RING_IDXS, PINKY_IDXS)

_LANE = 128          # TPU lane width
_TARGET_LANES = 512  # >=512-wide lane tiles reach ~85% of HBM roofline (measured v6e)
_MAX_SUB_TILE = 128  # sublane rows per block: 21*128*512*4B ~= 5.5 MiB per input buffer


def _round_up(n, m):
    return ((n + m - 1) // m) * m


def _cdiv(a, b):
    return -(-a // b)


def _group_max(x_ref, idxs):
    # Static max-tree over leading-axis slabs: each x_ref[i] is a dense (S_TILE, L)
    # 2-D tile, so every jnp.maximum is a full-vreg VPU op (no XLU, no masks).
    acc = x_ref[idxs[0]]
    for i in idxs[1:]:
        acc = jnp.maximum(acc, x_ref[i])
    return acc


def _pool_groups_kernel(x_ref, o_ref):
    # x_ref: (21, S_TILE, L), o_ref: (6, S_TILE, L)
    for g, idxs in enumerate(GROUPS):
        o_ref[g] = _group_max(x_ref, idxs)


def _pool_last_kernel(x_ref, o_ref):
    # x_ref: (6, S_TILE, L), o_ref: (1, S_TILE, L)
    o_ref[0] = _group_max(x_ref, tuple(range(6)))


def _pool_fused_kernel(x_ref, o_ref):
    # 21 keypoints -> 6 part maxes -> 1 overall max, entirely in registers.
    acc = _group_max(x_ref, GROUPS[0])
    for idxs in GROUPS[1:]:
        acc = jnp.maximum(acc, _group_max(x_ref, idxs))
    o_ref[0] = acc


def _choose_s_tile(S, itemsize):
    """Pick a sublane tile: dtype-aligned, >=2 blocks when possible, minimal padding."""
    # Minimum sublane multiple for packed dtypes: f32 -> 8, bf16 -> 16, int8/fp8 -> 32.
    sub_min = max(8, 32 // max(int(itemsize), 1))
    if S <= sub_min:
        return S  # single full-extent block (legal: equals the full array dim)
    # At least 2 blocks so the "parallel" grid axis gives both v7x TCs work;
    # otherwise just enough blocks to keep each block <= _MAX_SUB_TILE rows.
    n_blocks = max(2, _cdiv(S, _MAX_SUB_TILE))
    s_tile = _round_up(_cdiv(S, n_blocks), sub_min)
    return min(s_tile, _round_up(_MAX_SUB_TILE, sub_min))


def _run_pooling(x, kernel, in_k, out_k):
    B, C, T, K = x.shape
    assert K == in_k, f"expected {in_k} keypoints, got {K}"
    N = B * C * T

    # (B,C,T,K) -> (K, N): keypoint axis leading, big flat axis on lanes.
    x2 = jnp.moveaxis(x, 3, 0).reshape(K, N)

    # Lane-dense tiling: last dim L (multiple of 128, target 512),
    # sublane tile S_TILE (dtype-aligned multiple, or the full sublane extent).
    L = _TARGET_LANES if N >= _TARGET_LANES else _round_up(N, _LANE)
    S = _cdiv(N, L)
    S_TILE = _choose_s_tile(S, jnp.dtype(x.dtype).itemsize)
    S_pad = _round_up(S, S_TILE)
    N_pad = S_pad * L
    if N_pad != N:
        # Padded columns are independent of real columns and are sliced away below
        # (max is computed per-column, so pad value does not leak into real outputs).
        x2 = jnp.pad(x2, ((0, 0), (0, N_pad - N)))
    x3 = x2.reshape(K, S_pad, L)

    out3 = pl.pallas_call(
        kernel,
        out_shape=jax.ShapeDtypeStruct((out_k, S_pad, L), x.dtype),
        grid=(S_pad // S_TILE,),
        in_specs=[pl.BlockSpec((K, S_TILE, L), lambda i: (0, i, 0))],
        out_specs=pl.BlockSpec((out_k, S_TILE, L), lambda i: (0, i, 0)),
        compiler_params=pltpu.CompilerParams(
            dimension_semantics=("parallel",),
            vmem_limit_bytes=32 * 1024 * 1024,
        ),
    )(x3)

    out2 = out3.reshape(out_k, N_pad)[:, :N]
    return jnp.moveaxis(out2.reshape(out_k, B, C, T), 0, 3)


def mediapipe_hand_pooling(x, last=False):
    """Pallas equivalent of MediapipeHandPooling.forward (x: (B, C, T, K))."""
    if last:
        return _run_pooling(x, _pool_last_kernel, 6, 1)
    return _run_pooling(x, _pool_groups_kernel, 21, 6)


def mediapipe_hand_pooling_fused(x):
    """Fused last=False followed by last=True (21 -> 1) in a single kernel pass."""
    return _run_pooling(x, _pool_fused_kernel, 21, 1)


def _reference(x, last=False):
    if last:
        return jnp.max(x, axis=3, keepdims=True)
    parts = [jnp.max(x[:, :, :, jnp.array(g)], axis=3, keepdims=True) for g in GROUPS]
    return jnp.concatenate(parts, axis=3)


if __name__ == "__main__":
    key = jax.random.PRNGKey(0)
    B, C, T = 2, 4, 16
    x = jax.random.normal(key, (B, C, T, 21), dtype=jnp.float32)

    # Stage 1: 21 keypoints -> 6 pooled hand parts.
    y = jax.block_until_ready(mediapipe_hand_pooling(x, last=False))
    assert y.shape == (B, C, T, 6), y.shape
    y_ref = _reference(x, last=False)
    assert jnp.allclose(y, y_ref), "mismatch in grouped pooling"

    # Stage 2 (last=True): 6 -> 1.
    z = jax.block_until_ready(mediapipe_hand_pooling(y, last=True))
    assert z.shape == (B, C, T, 1), z.shape
    z_ref = _reference(y_ref, last=True)
    assert jnp.allclose(z, z_ref), "mismatch in last pooling"

    # Fused 21 -> 1 path matches the two-stage composition.
    w = jax.block_until_ready(mediapipe_hand_pooling_fused(x))
    assert w.shape == (B, C, T, 1), w.shape
    assert jnp.allclose(w, z_ref), "mismatch in fused pooling"

    # Ragged size (lane padding path: N = 150 -> padded to 256 lanes, S = 1).
    x2 = jax.random.normal(jax.random.PRNGKey(1), (1, 3, 50, 21), dtype=jnp.float32)
    y2 = jax.block_until_ready(mediapipe_hand_pooling(x2, last=False))
    assert jnp.allclose(y2, _reference(x2, last=False)), "mismatch with padded N"

    # Multi-block grid path (N = 8192 -> L = 512, S = 16 -> two sublane blocks).
    x3 = jax.random.normal(jax.random.PRNGKey(2), (2, 8, 512, 21), dtype=jnp.float32)
    y3 = jax.block_until_ready(mediapipe_hand_pooling(x3, last=False))
    assert jnp.allclose(y3, _reference(x3, last=False)), "mismatch with multi-block grid"

    print("KERNEL_OK")
</pallas_src>

<mosaic_0001>
module attributes {stable_mosaic.version = 11 : i64} {
  func.func @_pool_groups_kernel(%arg0: i32, %arg1: memref<21x1x128xf32, #tpu.memory_space<vmem>>, %arg2: memref<6x1x128xf32, #tpu.memory_space<vmem>>) attributes {dimension_semantics = [#tpu.dimension_semantics<parallel>], iteration_bounds = array<i64: 1>, scalar_prefetch = 0 : i64, scratch_operands = 0 : i64, tpu.core_type = #tpu.core_type<tc>, window_params = [{transform_indices = @transform_0, window_bounds = array<i64: 21, 1, 128>}, {transform_indices = @transform_1, window_bounds = array<i64: 6, 1, 128>}]} {
    %c0 = arith.constant 0 : index
    %c0_0 = arith.constant 0 : index
    %c0_1 = arith.constant 0 : index
    %0 = vector.load %arg1[%c0, %c0_0, %c0_1] : memref<21x1x128xf32, #tpu.memory_space<vmem>>, vector<1x1x128xf32>
    %1 = vector.shape_cast %0 : vector<1x1x128xf32> to vector<1x128xf32>
    %c1 = arith.constant 1 : index
    %c0_2 = arith.constant 0 : index
    %c0_3 = arith.constant 0 : index
    %2 = vector.load %arg1[%c1, %c0_2, %c0_3] : memref<21x1x128xf32, #tpu.memory_space<vmem>>, vector<1x1x128xf32>
    %3 = vector.shape_cast %2 : vector<1x1x128xf32> to vector<1x128xf32>
    %4 = arith.maximumf %1, %3 : vector<1x128xf32>
    %c5 = arith.constant 5 : index
    %c0_4 = arith.constant 0 : index
    %c0_5 = arith.constant 0 : index
    %5 = vector.load %arg1[%c5, %c0_4, %c0_5] : memref<21x1x128xf32, #tpu.memory_space<vmem>>, vector<1x1x128xf32>
    %6 = vector.shape_cast %5 : vector<1x1x128xf32> to vector<1x128xf32>
    %7 = arith.maximumf %4, %6 : vector<1x128xf32>
    %c9 = arith.constant 9 : index
    %c0_6 = arith.constant 0 : index
    %c0_7 = arith.constant 0 : index
    %8 = vector.load %arg1[%c9, %c0_6, %c0_7] : memref<21x1x128xf32, #tpu.memory_space<vmem>>, vector<1x1x128xf32>
    %9 = vector.shape_cast %8 : vector<1x1x128xf32> to vector<1x128xf32>
    %10 = arith.maximumf %7, %9 : vector<1x128xf32>
    %c13 = arith.constant 13 : index
    %c0_8 = arith.constant 0 : index
    %c0_9 = arith.constant 0 : index
    %11 = vector.load %arg1[%c13, %c0_8, %c0_9] : memref<21x1x128xf32, #tpu.memory_space<vmem>>, vector<1x1x128xf32>
    %12 = vector.shape_cast %11 : vector<1x1x128xf32> to vector<1x128xf32>
    %13 = arith.maximumf %10, %12 : vector<1x128xf32>
    %c17 = arith.constant 17 : index
    %c0_10 = arith.constant 0 : index
    %c0_11 = arith.constant 0 : index
    %14 = vector.load %arg1[%c17, %c0_10, %c0_11] : memref<21x1x128xf32, #tpu.memory_space<vmem>>, vector<1x1x128xf32>
    %15 = vector.shape_cast %14 : vector<1x1x128xf32> to vector<1x128xf32>
    %16 = arith.maximumf %13, %15 : vector<1x128xf32>
    %c0_12 = arith.constant 0 : index
    %c0_13 = arith.constant 0 : index
    %c0_14 = arith.constant 0 : index
    %17 = vector.load %arg2[%c0_12, %c0_13, %c0_14] : memref<6x1x128xf32, #tpu.memory_space<vmem>>, vector<1x1x128xf32>
    %18 = vector.shape_cast %17 : vector<1x1x128xf32> to vector<1x128xf32>
    %19 = vector.shape_cast %16 : vector<1x128xf32> to vector<1x1x128xf32>
    tpu.vector_store %arg2[%c0_12, %c0_13, %c0_14], %19 {strides = array<i32>} : memref<6x1x128xf32, #tpu.memory_space<vmem>>, vector<1x1x128xf32>,
    %c2 = arith.constant 2 : index
    %c0_15 = arith.constant 0 : index
    %c0_16 = arith.constant 0 : index
    %20 = vector.load %arg1[%c2, %c0_15, %c0_16] : memref<21x1x128xf32, #tpu.memory_space<vmem>>, vector<1x1x128xf32>
    %21 = vector.shape_cast %20 : vector<1x1x128xf32> to vector<1x128xf32>
    %c3 = arith.constant 3 : index
    %c0_17 = arith.constant 0 : index
    %c0_18 = arith.constant 0 : index
    %22 = vector.load %arg1[%c3, %c0_17, %c0_18] : memref<21x1x128xf32, #tpu.memory_space<vmem>>, vector<1x1x128xf32>
    %23 = vector.shape_cast %22 : vector<1x1x128xf32> to vector<1x128xf32>
    %24 = arith.maximumf %21, %23 : vector<1x128xf32>
    %c4 = arith.constant 4 : index
    %c0_19 = arith.constant 0 : index
    %c0_20 = arith.constant 0 : index
    %25 = vector.load %arg1[%c4, %c0_19, %c0_20] : memref<21x1x128xf32, #tpu.memory_space<vmem>>, vector<1x1x128xf32>
    %26 = vector.shape_cast %25 : vector<1x1x128xf32> to vector<1x128xf32>
    %27 = arith.maximumf %24, %26 : vector<1x128xf32>
    %c1_21 = arith.constant 1 : index
    %c0_22 = arith.constant 0 : index
    %c0_23 = arith.constant 0 : index
    %28 = vector.load %arg2[%c1_21, %c0_22, %c0_23] : memref<6x1x128xf32, #tpu.memory_space<vmem>>, vector<1x1x128xf32>
    %29 = vector.shape_cast %28 : vector<1x1x128xf32> to vector<1x128xf32>
    %30 = vector.shape_cast %27 : vector<1x128xf32> to vector<1x1x128xf32>
    tpu.vector_store %arg2[%c1_21, %c0_22, %c0_23], %30 {strides = array<i32>} : memref<6x1x128xf32, #tpu.memory_space<vmem>>, vector<1x1x128xf32>,
    %c6 = arith.constant 6 : index
    %c0_24 = arith.constant 0 : index
    %c0_25 = arith.constant 0 : index
    %31 = vector.load %arg1[%c6, %c0_24, %c0_25] : memref<21x1x128xf32, #tpu.memory_space<vmem>>, vector<1x1x128xf32>
    %32 = vector.shape_cast %31 : vector<1x1x128xf32> to vector<1x128xf32>
    %c7 = arith.constant 7 : index
    %c0_26 = arith.constant 0 : index
    %c0_27 = arith.constant 0 : index
    %33 = vector.load %arg1[%c7, %c0_26, %c0_27] : memref<21x1x128xf32, #tpu.memory_space<vmem>>, vector<1x1x128xf32>
    %34 = vector.shape_cast %33 : vector<1x1x128xf32> to vector<1x128xf32>
    %35 = arith.maximumf %32, %34 : vector<1x128xf32>
    %c8 = arith.constant 8 : index
    %c0_28 = arith.constant 0 : index
    %c0_29 = arith.constant 0 : index
    %36 = vector.load %arg1[%c8, %c0_28, %c0_29] : memref<21x1x128xf32, #tpu.memory_space<vmem>>, vector<1x1x128xf32>
    %37 = vector.shape_cast %36 : vector<1x1x128xf32> to vector<1x128xf32>
    %38 = arith.maximumf %35, %37 : vector<1x128xf32>
    %c2_30 = arith.constant 2 : index
    %c0_31 = arith.constant 0 : index
    %c0_32 = arith.constant 0 : index
    %39 = vector.load %arg2[%c2_30, %c0_31, %c0_32] : memref<6x1x128xf32, #tpu.memory_space<vmem>>, vector<1x1x128xf32>
    %40 = vector.shape_cast %39 : vector<1x1x128xf32> to vector<1x128xf32>
    %41 = vector.shape_cast %38 : vector<1x128xf32> to vector<1x1x128xf32>
    tpu.vector_store %arg2[%c2_30, %c0_31, %c0_32], %41 {strides = array<i32>} : memref<6x1x128xf32, #tpu.memory_space<vmem>>, vector<1x1x128xf32>,
    %c10 = arith.constant 10 : index
    %c0_33 = arith.constant 0 : index
    %c0_34 = arith.constant 0 : index
    %42 = vector.load %arg1[%c10, %c0_33, %c0_34] : memref<21x1x128xf32, #tpu.memory_space<vmem>>, vector<1x1x128xf32>
    %43 = vector.shape_cast %42 : vector<1x1x128xf32> to vector<1x128xf32>
    %c11 = arith.constant 11 : index
    %c0_35 = arith.constant 0 : index
    %c0_36 = arith.constant 0 : index
    %44 = vector.load %arg1[%c11, %c0_35, %c0_36] : memref<21x1x128xf32, #tpu.memory_space<vmem>>, vector<1x1x128xf32>
    %45 = vector.shape_cast %44 : vector<1x1x128xf32> to vector<1x128xf32>
    %46 = arith.maximumf %43, %45 : vector<1x128xf32>
    %c12 = arith.constant 12 : index
    %c0_37 = arith.constant 0 : index
    %c0_38 = arith.constant 0 : index
    %47 = vector.load %arg1[%c12, %c0_37, %c0_38] : memref<21x1x128xf32, #tpu.memory_space<vmem>>, vector<1x1x128xf32>
    %48 = vector.shape_cast %47 : vector<1x1x128xf32> to vector<1x128xf32>
    %49 = arith.maximumf %46, %48 : vector<1x128xf32>
    %c3_39 = arith.constant 3 : index
    %c0_40 = arith.constant 0 : index
    %c0_41 = arith.constant 0 : index
    %50 = vector.load %arg2[%c3_39, %c0_40, %c0_41] : memref<6x1x128xf32, #tpu.memory_space<vmem>>, vector<1x1x128xf32>
    %51 = vector.shape_cast %50 : vector<1x1x128xf32> to vector<1x128xf32>
    %52 = vector.shape_cast %49 : vector<1x128xf32> to vector<1x1x128xf32>
    tpu.vector_store %arg2[%c3_39, %c0_40, %c0_41], %52 {strides = array<i32>} : memref<6x1x128xf32, #tpu.memory_space<vmem>>, vector<1x1x128xf32>,
    %c14 = arith.constant 14 : index
    %c0_42 = arith.constant 0 : index
    %c0_43 = arith.constant 0 : index
    %53 = vector.load %arg1[%c14, %c0_42, %c0_43] : memref<21x1x128xf32, #tpu.memory_space<vmem>>, vector<1x1x128xf32>
    %54 = vector.shape_cast %53 : vector<1x1x128xf32> to vector<1x128xf32>
    %c15 = arith.constant 15 : index
    %c0_44 = arith.constant 0 : index
    %c0_45 = arith.constant 0 : index
    %55 = vector.load %arg1[%c15, %c0_44, %c0_45] : memref<21x1x128xf32, #tpu.memory_space<vmem>>, vector<1x1x128xf32>
    %56 = vector.shape_cast %55 : vector<1x1x128xf32> to vector<1x128xf32>
    %57 = arith.maximumf %54, %56 : vector<1x128xf32>
    %c16 = arith.constant 16 : index
    %c0_46 = arith.constant 0 : index
    %c0_47 = arith.constant 0 : index
    %58 = vector.load %arg1[%c16, %c0_46, %c0_47] : memref<21x1x128xf32, #tpu.memory_space<vmem>>, vector<1x1x128xf32>
    %59 = vector.shape_cast %58 : vector<1x1x128xf32> to vector<1x128xf32>
    %60 = arith.maximumf %57, %59 : vector<1x128xf32>
    %c4_48 = arith.constant 4 : index
    %c0_49 = arith.constant 0 : index
    %c0_50 = arith.constant 0 : index
    %61 = vector.load %arg2[%c4_48, %c0_49, %c0_50] : memref<6x1x128xf32, #tpu.memory_space<vmem>>, vector<1x1x128xf32>
    %62 = vector.shape_cast %61 : vector<1x1x128xf32> to vector<1x128xf32>
    %63 = vector.shape_cast %60 : vector<1x128xf32> to vector<1x1x128xf32>
    tpu.vector_store %arg2[%c4_48, %c0_49, %c0_50], %63 {strides = array<i32>} : memref<6x1x128xf32, #tpu.memory_space<vmem>>, vector<1x1x128xf32>,
    %c18 = arith.constant 18 : index
    %c0_51 = arith.constant 0 : index
    %c0_52 = arith.constant 0 : index
    %64 = vector.load %arg1[%c18, %c0_51, %c0_52] : memref<21x1x128xf32, #tpu.memory_space<vmem>>, vector<1x1x128xf32>
    %65 = vector.shape_cast %64 : vector<1x1x128xf32> to vector<1x128xf32>
    %c19 = arith.constant 19 : index
    %c0_53 = arith.constant 0 : index
    %c0_54 = arith.constant 0 : index
    %66 = vector.load %arg1[%c19, %c0_53, %c0_54] : memref<21x1x128xf32, #tpu.memory_space<vmem>>, vector<1x1x128xf32>
    %67 = vector.shape_cast %66 : vector<1x1x128xf32> to vector<1x128xf32>
    %68 = arith.maximumf %65, %67 : vector<1x128xf32>
    %c20 = arith.constant 20 : index
    %c0_55 = arith.constant 0 : index
    %c0_56 = arith.constant 0 : index
    %69 = vector.load %arg1[%c20, %c0_55, %c0_56] : memref<21x1x128xf32, #tpu.memory_space<vmem>>, vector<1x1x128xf32>
    %70 = vector.shape_cast %69 : vector<1x1x128xf32> to vector<1x128xf32>
    %71 = arith.maximumf %68, %70 : vector<1x128xf32>
    %c5_57 = arith.constant 5 : index
    %c0_58 = arith.constant 0 : index
    %c0_59 = arith.constant 0 : index
    %72 = vector.load %arg2[%c5_57, %c0_58, %c0_59] : memref<6x1x128xf32, #tpu.memory_space<vmem>>, vector<1x1x128xf32>
    %73 = vector.shape_cast %72 : vector<1x1x128xf32> to vector<1x128xf32>
    %74 = vector.shape_cast %71 : vector<1x128xf32> to vector<1x1x128xf32>
    tpu.vector_store %arg2[%c5_57, %c0_58, %c0_59], %74 {strides = array<i32>} : memref<6x1x128xf32, #tpu.memory_space<vmem>>, vector<1x1x128xf32>,
    return
  }
  func.func @transform_0(%arg0: i32) -> (i32, i32, i32) {
    %c0_i32 = arith.constant 0 : i32
    %c0_i32_0 = arith.constant 0 : i32
    %c0_i32_1 = arith.constant 0 : i32
    return %c0_i32, %arg0, %c0_i32_0 : i32, i32, i32
  }
  func.func @transform_1(%arg0: i32) -> (i32, i32, i32) {
    %c0_i32 = arith.constant 0 : i32
    %c0_i32_0 = arith.constant 0 : i32
    %c0_i32_1 = arith.constant 0 : i32
    return %c0_i32, %arg0, %c0_i32_0 : i32, i32, i32
  }
}

</mosaic_0001>

<bundles_post_ra>
// kernel: tpu_custom_call.1
= control target key start
LH: loop header
LB: loop body
LE: loop exit
PB: predicated region body
PF: predicated region fallthrough
CT: control target
= control target key end

     0   :  { %6 = vsyncpa [#allocation3], 0  ;;  %s193_s0 = inlined_call_operand.hbm [shape: f32[21,1,128], index: 0, kind: input, shape index: {}]   ;;  %s194_s1 = inlined_call_operand.hbm [shape: f32[6,1,128], index: 1, kind: output, shape index: {}]  }
   0x1   :  { %7 = vsyncpa [#allocation4], 0  ;;  %s12_s8 = sshll.u32 %s193_s0, 4  ;;  %s167_s9 = smov [#allocation2]   ;;  %s13_s8 = int_to_ptr.hbm [resolvable:$true] %s12_s8 }
   0x2   :  { %s14_s10 = sshll.u32 %s167_s9, 4  ;;  %s168_s11 = smov 16   ;;  %s15_s10 = int_to_ptr.vmem [resolvable:$true] %s14_s10 }
   0x3   :  { %s169_s12 = smov 1  }
   0x4   :  { %20 = dma.hbm_to_vmem [thread:$0]  %s13_s8, 336, %s15_s10, [#allocation3], %s168_s11, %s168_s11, %s169_s12  }
   0x5   :  { %163 = dma.done.wait [#allocation3], 336  }
   0x6   :  { %164 = vsyncadd [#allocation3], 4294966960  ;;  %v25_v0 = vld [vmem:[#allocation2] sm:$0x1]  ;;  %v27_v1 = vld [vmem:[#allocation2 + $0x1] sm:$0x1] }
   0x7   :  { %v30_v2 = vld [vmem:[#allocation2 + $0x5] sm:$0x1]  ;;  %v28_v3 = vmax.f32 %v25_v0, %v27_v1  ;;  %v33_v4 = vld [vmem:[#allocation2 + $0x9] sm:$0x1]  ;;  %v36_v5 = vld [vmem:[#allocation2 + $0xd] sm:$0x1] }
   0x8   :  { %v43_v6 = vld [vmem:[#allocation2 + $0x2] sm:$0x1]  ;;  %v45_v7 = vld [vmem:[#allocation2 + $0x3] sm:$0x1]  ;;  %v48_v8 = vld [vmem:[#allocation2 + $0x4] sm:$0x1] }
   0x9   :  { %v31_v9 = vmax.f32 %v28_v3, %v30_v2  ;;  %v46_v10 = vmax.f32 %v43_v6, %v45_v7  ;;  %v53_v11 = vld [vmem:[#allocation2 + $0x6] sm:$0x1]  ;;  %v55_v12 = vld [vmem:[#allocation2 + $0x7] sm:$0x1]  ;;  %v58_v13 = vld [vmem:[#allocation2 + $0x8] sm:$0x1] }
   0xa   :  { %v39_v14 = vld [vmem:[#allocation2 + $0x11] sm:$0x1]  ;;  %v56_v15 = vmax.f32 %v53_v11, %v55_v12  ;;  %v63_v16 = vld [vmem:[#allocation2 + $0xa] sm:$0x1]  ;;  %v65_v17 = vld [vmem:[#allocation2 + $0xb] sm:$0x1] }
   0xb   :  { %v68_v18 = vld [vmem:[#allocation2 + $0xc] sm:$0x1]  ;;  %v34_v19 = vmax.f32 %v31_v9, %v33_v4  ;;  %v49_v20 = vmax.f32 %v46_v10, %v48_v8  ;;  %v66_v21 = vmax.f32 %v63_v16, %v65_v17  ;;  %v73_v22 = vld [vmem:[#allocation2 + $0xe] sm:$0x1]  ;;  %v75_v23 = vld [vmem:[#allocation2 + $0xf] sm:$0x1] }
   0xc   :  { %v78_v24 = vld [vmem:[#allocation2 + $0x10] sm:$0x1]  ;;  %v59_v25 = vmax.f32 %v56_v15, %v58_v13  ;;  %v76_v26 = vmax.f32 %v73_v22, %v75_v23  ;;  %v83_v27 = vld [vmem:[#allocation2 + $0x12] sm:$0x1]  ;;  %v85_v28 = vld [vmem:[#allocation2 + $0x13] sm:$0x1] }
   0xd   :  { %v88_v29 = vld [vmem:[#allocation2 + $0x14] sm:$0x1]  ;;  %v37_v30 = vmax.f32 %v34_v19, %v36_v5  ;;  %51 = vst [vmem:[#allocation5 + $0x1] sm:$0x1] %v49_v20  ;;  %v69_v31 = vmax.f32 %v66_v21, %v68_v18  ;;  %v86_v32 = vmax.f32 %v83_v27, %v85_v28  ;;  %s170_s0 = smov [#allocation5]   ;;  %s98_s16 = sshll.u32 %s194_s1, 4  ;;  %s99_s16 = int_to_ptr.hbm [resolvable:$true] %s98_s16 }
   0xe   :  { %s96_s13 = sshll.u32 %s170_s0, 4  ;;  %61 = vst [vmem:[#allocation5 + $0x2] sm:$0x1] %v59_v25  ;;  %v79_v33 = vmax.f32 %v76_v26, %v78_v24  ;;  %s97_s13 = int_to_ptr.vmem [resolvable:$true] %s96_s13 }
   0xf   :  { %v40_v34 = vmax.f32 %v37_v30, %v39_v14  ;;  %71 = vst [vmem:[#allocation5 + $0x3] sm:$0x1] %v69_v31  ;;  %v89_v35 = vmax.f32 %v86_v32, %v88_v29 }
  0x10   :  { %81 = vst [vmem:[#allocation5 + $0x4] sm:$0x1] %v79_v33 }
  0x11   :  { %41 = vst [vmem:[#allocation5] sm:$0x1] %v40_v34 }
  0x12   :  { %91 = vst [vmem:[#allocation5 + $0x5] sm:$0x1] %v89_v35 }
  0x13   :  { %104 = dma.vmem_to_hbm [thread:$0]  %s97_s13, 96, %s99_s16, [#allocation4], %s168_s11, %s168_s11, %s169_s12  }
  0x14   :  { %165 = dma.done.wait [#allocation4], 96  }
  0x15   :  { %166 = vsyncadd [#allocation4], 4294967200 }
  0x16   :  { %109 = vsyncpa [#allocation3], 1 }
  0x17   :  { %110 = vsyncpa [#allocation4], 1 }

</bundles_post_ra>
